<compile_context>
chip_gen: v5e
topology: v5e:2x2
jax: 0.10.0
libtpu: 0.0.40
codegen_flags: <defaults>
</compile_context>

<pallas_src>
import functools
import math

import jax
import jax.numpy as jnp
from jax import lax
from jax.experimental import pallas as pl
from jax.experimental.pallas import tpu as pltpu

# Large finite negative used instead of -inf so the online softmax never hits inf-inf=NaN.
MASK_VALUE = -1e30


# ---------------------------------------------------------------------------
# Tiling helpers
# ---------------------------------------------------------------------------
def _tile(dim, target, align):
    """Largest multiple of `align` dividing `dim` that is <= target, else the full dim."""
    if dim <= target:
        return dim
    t = (target // align) * align
    while t >= align:
        if dim % t == 0:
            return t
        t -= align
    return dim  # block == full dim is always legal


def _attn_tile(seq_len, target=128):
    """Square q/kv tile for attention (multiple of 128 lanes when possible)."""
    if seq_len <= target:
        return seq_len
    t = (target // 128) * 128
    while t >= 128:
        if seq_len % t == 0:
            return t
        t -= 128
    return seq_len  # fall back to a single dense block


# ---------------------------------------------------------------------------
# Tiled linear projection: y = x @ W.T + b   (W in PyTorch [out, in] layout)
# ---------------------------------------------------------------------------
def _linear_kernel(x_ref, w_ref, b_ref, o_ref, acc_ref):
    @pl.when(pl.program_id(2) == 0)
    def _():
        acc_ref[...] = jnp.zeros_like(acc_ref)

    acc_ref[...] += jnp.dot(x_ref[...], w_ref[...],
                            preferred_element_type=jnp.float32)

    @pl.when(pl.program_id(2) == pl.num_programs(2) - 1)
    def _():
        o_ref[...] = (acc_ref[...] + b_ref[...].astype(jnp.float32)).astype(o_ref.dtype)


def linear(x2d, weight, bias):
    m, k_dim = x2d.shape
    n = weight.shape[0]
    w_t = weight.T                     # pre-transpose once to [in, out] (lane-dense for MXU)
    b2 = bias.reshape(1, n)

    tm = _tile(m, 256, 8)
    tn = _tile(n, 256, 128)
    tk = _tile(k_dim, 512, 128)
    grid = (m // tm, n // tn, k_dim // tk)

    return pl.pallas_call(
        _linear_kernel,
        out_shape=jax.ShapeDtypeStruct((m, n), x2d.dtype),
        grid=grid,
        in_specs=[
            pl.BlockSpec((tm, tk), lambda i, j, kk: (i, kk)),
            pl.BlockSpec((tk, tn), lambda i, j, kk: (kk, j)),
            pl.BlockSpec((1, tn), lambda i, j, kk: (0, j)),
        ],
        out_specs=pl.BlockSpec((tm, tn), lambda i, j, kk: (i, j)),
        scratch_shapes=[pltpu.VMEM((tm, tn), jnp.float32)],
        compiler_params=pltpu.CompilerParams(
            dimension_semantics=("parallel", "parallel", "arbitrary")),
    )(x2d, w_t, b2)


# ---------------------------------------------------------------------------
# Head-batched windowed flash attention kernel (values only — the hot path)
# ---------------------------------------------------------------------------
def _swa_flash_kernel(q_ref, k_ref, v_ref, row_keep_ref, col_bias_ref, o_ref,
                      m_sc, l_sc, acc_sc,
                      *, window_size, block_q, block_kv, n_left, n_kv_blocks):
    qi = pl.program_id(1)
    koff = pl.program_id(2)
    kv_blk = qi + koff - n_left          # true kv block index (may be out of range)

    @pl.when(koff == 0)
    def _init():
        m_sc[...] = jnp.full_like(m_sc, MASK_VALUE)
        l_sc[...] = jnp.zeros_like(l_sc)
        acc_sc[...] = jnp.zeros_like(acc_sc)

    @pl.when(jnp.logical_and(kv_blk >= 0, kv_blk < n_kv_blocks))
    def _compute():
        q = q_ref[0]                     # (H, block_q, Dh)  native dtype, 1/sqrt(Dh) folded
        k = k_ref[0]                     # (H, block_kv, Dh)
        v = v_ref[0]                     # (H, block_kv, Dh)
        s = jnp.einsum("hqd,hkd->hqk", q, k,
                       preferred_element_type=jnp.float32)   # (H, block_q, block_kv)

        # Sliding-window mask in *relative* coordinates: row - col depends only on koff.
        rel = (n_left - koff) * block_kv
        diff = rel + (lax.broadcasted_iota(jnp.int32, (block_q, block_kv), 0)
                      - lax.broadcasted_iota(jnp.int32, (block_q, block_kv), 1))
        in_window = jnp.abs(diff) <= (window_size // 2)
        s = jnp.where(in_window[None], s, MASK_VALUE)
        # Hoisted additive column padding bias (0 keep / MASK_VALUE padded).
        s = s + col_bias_ref[0][None]    # (1, 1, block_kv) broadcasts over heads/rows

        m_prev = m_sc[...]
        m_new = jnp.maximum(m_prev, jnp.max(s, axis=-1, keepdims=True))
        alpha = jnp.exp(m_prev - m_new)
        p = jnp.exp(s - m_new)
        l_sc[...] = alpha * l_sc[...] + jnp.sum(p, axis=-1, keepdims=True)
        acc_sc[...] = alpha * acc_sc[...] + jnp.einsum(
            "hqk,hkd->hqd", p.astype(v.dtype), v,
            preferred_element_type=jnp.float32)
        m_sc[...] = m_new

    @pl.when(koff == pl.num_programs(2) - 1)
    def _finalize():
        denom = jnp.maximum(l_sc[...], 1e-30)
        out = acc_sc[...] * pl.reciprocal(denom, approx=True)
        # Rows of padded tokens become exactly zero (matches softmax -> nan_to_num(0)).
        out = out * row_keep_ref[0][None]
        o_ref[0] = out.astype(o_ref.dtype)


def sliding_window_attention_pallas(q, k, v, window_size, padding_mask):
    """q, k, v: [B, H, S, Dh]; padding_mask: [B, S] (1 keep / 0 pad) -> values [B, H, S, Dh]."""
    assert window_size % 2 == 0, "window size must be an even number"
    b, h, s, dh = q.shape
    t = _attn_tile(s)
    assert s % t == 0
    n_blk = s // t
    w2 = window_size // 2
    n_left = min(-(-w2 // t), n_blk - 1)
    n_right = min((t - 1 + w2) // t, n_blk - 1)
    n_koff = n_left + n_right + 1

    # Fold 1/sqrt(head_dim) into q (one cheap S*Dh multiply instead of scaling S*S scores).
    q_scaled = q * jnp.asarray(1.0 / math.sqrt(dh), q.dtype)

    pm = padding_mask.astype(jnp.float32)
    col_bias = jnp.where(pm > 0.5, jnp.float32(0.0), jnp.float32(MASK_VALUE)).reshape(b, 1, s)
    row_keep = pm.reshape(b, s, 1)

    kernel = functools.partial(
        _swa_flash_kernel, window_size=window_size, block_q=t, block_kv=t,
        n_left=n_left, n_kv_blocks=n_blk)

    def q_map(bb, qi, ko):
        return (bb, 0, qi, 0)

    def kv_map(bb, qi, ko):
        return (bb, 0, jnp.clip(qi + ko - n_left, 0, n_blk - 1), 0)

    def colbias_map(bb, qi, ko):
        return (bb, 0, jnp.clip(qi + ko - n_left, 0, n_blk - 1))

    values = pl.pallas_call(
        kernel,
        out_shape=jax.ShapeDtypeStruct((b, h, s, dh), q.dtype),
        grid=(b, n_blk, n_koff),
        in_specs=[
            pl.BlockSpec((1, h, t, dh), q_map),
            pl.BlockSpec((1, h, t, dh), kv_map),
            pl.BlockSpec((1, h, t, dh), kv_map),
            pl.BlockSpec((1, t, 1), lambda bb, qi, ko: (bb, qi, 0)),
            pl.BlockSpec((1, 1, t), colbias_map),
        ],
        out_specs=pl.BlockSpec((1, h, t, dh), q_map),
        scratch_shapes=[
            pltpu.VMEM((h, t, 1), jnp.float32),     # running max
            pltpu.VMEM((h, t, 1), jnp.float32),     # running denom
            pltpu.VMEM((h, t, dh), jnp.float32),    # output accumulator
        ],
        compiler_params=pltpu.CompilerParams(
            dimension_semantics=("parallel", "parallel", "arbitrary"),
            vmem_limit_bytes=64 * 1024 * 1024),
    )(q_scaled, k, v, row_keep, col_bias)
    return values


# ---------------------------------------------------------------------------
# Dense kernel that also emits the attention matrix (only for return_attention=True)
# ---------------------------------------------------------------------------
def _swa_dense_kernel(q_ref, k_ref, v_ref, row_keep_ref, col_bias_ref,
                      o_ref, attn_ref, *, window_size):
    q = q_ref[0, 0]
    k = k_ref[0, 0]
    v = v_ref[0, 0]
    s_len = q.shape[0]
    scores = lax.dot_general(q, k, (((1,), (1,)), ((), ())),
                             preferred_element_type=jnp.float32)       # (S, S)
    row_i = lax.broadcasted_iota(jnp.int32, (s_len, s_len), 0)
    col_j = lax.broadcasted_iota(jnp.int32, (s_len, s_len), 1)
    scores = jnp.where(jnp.abs(row_i - col_j) <= (window_size // 2), scores, MASK_VALUE)
    scores = scores + col_bias_ref[0]                                  # column padding
    m = jnp.max(scores, axis=-1, keepdims=True)
    p = jnp.exp(scores - m)
    denom = jnp.maximum(jnp.sum(p, axis=-1, keepdims=True), 1e-30)
    a = p * pl.reciprocal(denom, approx=True)
    a = a * row_keep_ref[0]                                            # padded rows -> 0
    attn_ref[0, 0] = a.astype(attn_ref.dtype)
    o_ref[0, 0] = lax.dot_general(a.astype(v.dtype), v, (((1,), (0,)), ((), ())),
                                  preferred_element_type=jnp.float32).astype(o_ref.dtype)


def sliding_window_attention_with_probs(q, k, v, window_size, padding_mask):
    """Debug path: also returns the [B, H, S, S] probabilities (dense per (b, h))."""
    assert window_size % 2 == 0, "window size must be an even number"
    b, h, s, dh = q.shape
    q_scaled = q * jnp.asarray(1.0 / math.sqrt(dh), q.dtype)
    pm = padding_mask.astype(jnp.float32)
    col_bias = jnp.where(pm > 0.5, jnp.float32(0.0), jnp.float32(MASK_VALUE)).reshape(b, 1, s)
    row_keep = pm.reshape(b, s, 1)
    kernel = functools.partial(_swa_dense_kernel, window_size=window_size)
    values, attn = pl.pallas_call(
        kernel,
        out_shape=(jax.ShapeDtypeStruct((b, h, s, dh), q.dtype),
                   jax.ShapeDtypeStruct((b, h, s, s), jnp.float32)),
        grid=(b, h),
        in_specs=[
            pl.BlockSpec((1, 1, s, dh), lambda bb, hh: (bb, hh, 0, 0)),
            pl.BlockSpec((1, 1, s, dh), lambda bb, hh: (bb, hh, 0, 0)),
            pl.BlockSpec((1, 1, s, dh), lambda bb, hh: (bb, hh, 0, 0)),
            pl.BlockSpec((1, s, 1), lambda bb, hh: (bb, 0, 0)),
            pl.BlockSpec((1, 1, s), lambda bb, hh: (bb, 0, 0)),
        ],
        out_specs=(
            pl.BlockSpec((1, 1, s, dh), lambda bb, hh: (bb, hh, 0, 0)),
            pl.BlockSpec((1, 1, s, s), lambda bb, hh: (bb, hh, 0, 0)),
        ),
        compiler_params=pltpu.CompilerParams(
            dimension_semantics=("parallel", "parallel")),
    )(q_scaled, k, v, row_keep, col_bias)
    return values, attn


# ---------------------------------------------------------------------------
# MultiHeadAttention module (parameters + forward)
# ---------------------------------------------------------------------------
def init_mha_params(key, input_dim, embed_dim):
    k1, k2 = jax.random.split(key)

    def xavier_uniform(k, shape):   # shape = (fan_out, fan_in), matches nn.Linear.weight
        fan_out, fan_in = shape
        bound = math.sqrt(6.0 / (fan_in + fan_out))
        return jax.random.uniform(k, shape, jnp.float32, -bound, bound)

    return {
        "qkv_w": xavier_uniform(k1, (3 * embed_dim, input_dim)),
        "qkv_b": jnp.zeros((3 * embed_dim,), jnp.float32),
        "o_w": xavier_uniform(k2, (embed_dim, embed_dim)),
        "o_b": jnp.zeros((embed_dim,), jnp.float32),
    }


def multi_head_attention(params, x, padding_mask, num_heads, window_size,
                         return_attention=False):
    bsz, s, _ = x.shape
    embed_dim = params["o_w"].shape[0]
    head_dim = embed_dim // num_heads

    qkv = linear(x.reshape(bsz * s, -1), params["qkv_w"], params["qkv_b"])
    qkv = qkv.reshape(bsz, s, num_heads, 3 * head_dim).transpose(0, 2, 1, 3)
    q, k, v = jnp.split(qkv, 3, axis=-1)                    # each [B, H, S, Dh]

    if return_attention:
        values, attn = sliding_window_attention_with_probs(q, k, v, window_size, padding_mask)
    else:
        values = sliding_window_attention_pallas(q, k, v, window_size, padding_mask)
        attn = None

    values = values.transpose(0, 2, 1, 3).reshape(bsz, s, embed_dim)
    o = linear(values.reshape(bsz * s, embed_dim), params["o_w"], params["o_b"])
    o = o.reshape(bsz, s, embed_dim)
    if return_attention:
        return o, attn
    return o


# ---------------------------------------------------------------------------
# Pure-JAX reference (mirrors the PyTorch forward) for correctness checks
# ---------------------------------------------------------------------------
def _reference_mha(params, x, padding_mask, num_heads, window_size):
    bsz, s, _ = x.shape
    embed_dim = params["o_w"].shape[0]
    head_dim = embed_dim // num_heads
    qkv = x @ params["qkv_w"].T + params["qkv_b"]
    qkv = qkv.reshape(bsz, s, num_heads, 3 * head_dim).transpose(0, 2, 1, 3)
    q, k, v = jnp.split(qkv, 3, axis=-1)
    scores = jnp.einsum("bhid,bhjd->bhij", q, k)
    idx = jnp.arange(s)
    in_window = jnp.abs(idx[:, None] - idx[None, :]) <= window_size // 2
    b = jnp.where(in_window[None, None], scores, -jnp.inf)
    pm = padding_mask.astype(jnp.float32)
    full_pad = jnp.minimum(pm[:, None, None, :], pm[:, None, :, None])
    b = jnp.where(full_pad != 1.0, -jnp.inf, b)
    b = b / math.sqrt(head_dim)
    a = jnp.nan_to_num(jax.nn.softmax(b, axis=-1), nan=0.0)
    y = jnp.einsum("bhij,bhjd->bhid", a, v)
    values = y.transpose(0, 2, 1, 3).reshape(bsz, s, embed_dim)
    return values @ params["o_w"].T + params["o_b"], a


if __name__ == "__main__":
    key = jax.random.PRNGKey(0)
    kp, kx, kp2, kx2 = jax.random.split(key, 4)

    # Matmuls run at native MXU precision, so comparisons against the XLA reference use a
    # bf16-pass commensurate tolerance.
    TOL = dict(atol=2e-2, rtol=2e-2)

    # --- small check: B=2, S=8, D=16, heads=2, window=4 (also exercises return_attention) ---
    B, S, D = 2, 8, 16
    num_heads, window_size = 2, 4
    params = init_mha_params(kp, D, D)
    x = jax.random.normal(kx, (B, S, D), jnp.float32)
    padding_mask = jnp.array(
        [[1, 1, 1, 1, 1, 1, 1, 1],
         [1, 1, 1, 1, 1, 1, 0, 0]], dtype=jnp.float32)

    out = multi_head_attention(params, x, padding_mask, num_heads, window_size)
    out = jax.block_until_ready(out)
    ref_o, ref_a = _reference_mha(params, x, padding_mask, num_heads, window_size)
    assert out.shape == (B, S, D)
    assert bool(jnp.allclose(out, ref_o, **TOL)), "values mismatch (flash path)"

    out2, attn2 = multi_head_attention(params, x, padding_mask, num_heads, window_size,
                                       return_attention=True)
    jax.block_until_ready((out2, attn2))
    assert bool(jnp.allclose(out2, ref_o, **TOL)), "values mismatch (attn path)"
    assert bool(jnp.allclose(attn2, ref_a, **TOL)), "attention mismatch"

    # --- slightly larger check: exercises multi-block windowed tiling + kv-block skipping ---
    B2, S2, D2 = 1, 256, 64
    nh2, ws2 = 4, 64
    params2 = init_mha_params(kp2, D2, D2)
    x2 = jax.random.normal(kx2, (B2, S2, D2), jnp.float32)
    pm2 = jnp.ones((B2, S2), jnp.float32).at[:, 216:].set(0.0)
    out_big = multi_head_attention(params2, x2, pm2, nh2, ws2)
    out_big = jax.block_until_ready(out_big)
    ref_big, _ = _reference_mha(params2, x2, pm2, nh2, ws2)
    assert bool(jnp.allclose(out_big, ref_big, **TOL)), "values mismatch (tiled path)"

    print("KERNEL_OK")
</pallas_src>

<mosaic_0001>
module attributes {stable_mosaic.version = 11 : i64} {
  func.func @_linear_kernel(%arg0: i32, %arg1: i32, %arg2: i32, %arg3: memref<16x16xf32, #tpu.memory_space<vmem>>, %arg4: memref<16x48xf32, #tpu.memory_space<vmem>>, %arg5: memref<1x48xf32, #tpu.memory_space<vmem>>, %arg6: memref<16x48xf32, #tpu.memory_space<vmem>>, %arg7: memref<16x48xf32, #tpu.memory_space<vmem>>) attributes {dimension_semantics = [#tpu.dimension_semantics<parallel>, #tpu.dimension_semantics<parallel>, #tpu.dimension_semantics<arbitrary>], iteration_bounds = array<i64: 1, 1, 1>, scalar_prefetch = 0 : i64, scratch_operands = 1 : i64, tpu.core_type = #tpu.core_type<tc>, window_params = [{transform_indices = @transform_0, window_bounds = array<i64: 16, 16>}, {transform_indices = @transform_1, window_bounds = array<i64: 16, 48>}, {transform_indices = @transform_2, window_bounds = array<i64: 1, 48>}, {transform_indices = @transform_3, window_bounds = array<i64: 16, 48>}]} {
    %c0_i32 = arith.constant 0 : i32
    %0 = arith.cmpi eq, %arg2, %c0_i32 : i32
    %1 = arith.extui %0 : i1 to i32
    %c0_i32_0 = arith.constant 0 : i32
    %2 = arith.cmpi ne, %1, %c0_i32_0 : i32
    scf.if %2 {
      %cst_10 = arith.constant 0.000000e+00 : f32
      %12 = vector.broadcast %cst_10 : f32 to vector<16x48xf32>
      %c0_11 = arith.constant 0 : index
      %c0_12 = arith.constant 0 : index
      %13 = vector.load %arg7[%c0_11, %c0_12] : memref<16x48xf32, #tpu.memory_space<vmem>>, vector<16x48xf32>
      tpu.vector_store %arg7[%c0_11, %c0_12], %12 {strides = array<i32>} : memref<16x48xf32, #tpu.memory_space<vmem>>, vector<16x48xf32>,
    } else {
    }
    %c0 = arith.constant 0 : index
    %c0_1 = arith.constant 0 : index
    %3 = vector.load %arg7[%c0, %c0_1] : memref<16x48xf32, #tpu.memory_space<vmem>>, vector<16x48xf32>
    %c0_2 = arith.constant 0 : index
    %c0_3 = arith.constant 0 : index
    %4 = vector.load %arg3[%c0_2, %c0_3] : memref<16x16xf32, #tpu.memory_space<vmem>>, vector<16x16xf32>
    %c0_4 = arith.constant 0 : index
    %c0_5 = arith.constant 0 : index
    %5 = vector.load %arg4[%c0_4, %c0_5] : memref<16x48xf32, #tpu.memory_space<vmem>>, vector<16x48xf32>
    %cst = arith.constant dense<0.000000e+00> : vector<16x48xf32>
    %6 = tpu.matmul %4, %5, %cst {dimension_numbers = #tpu.dot_dimension_numbers<[1], [0], [0], [1], [0, 0, 1, 1], [], []>} : vector<16x16xf32>, vector<16x48xf32>, vector<16x48xf32> -> vector<16x48xf32>
    %7 = arith.addf %3, %6 : vector<16x48xf32>
    %c0_6 = arith.constant 0 : index
    %c0_7 = arith.constant 0 : index
    %8 = vector.load %arg7[%c0_6, %c0_7] : memref<16x48xf32, #tpu.memory_space<vmem>>, vector<16x48xf32>
    tpu.vector_store %arg7[%c0_6, %c0_7], %7 {strides = array<i32>} : memref<16x48xf32, #tpu.memory_space<vmem>>, vector<16x48xf32>,
    %c0_i32_8 = arith.constant 0 : i32
    %9 = arith.cmpi eq, %arg2, %c0_i32_8 : i32
    %10 = arith.extui %9 : i1 to i32
    %c0_i32_9 = arith.constant 0 : i32
    %11 = arith.cmpi ne, %10, %c0_i32_9 : i32
    scf.if %11 {
      %c0_10 = arith.constant 0 : index
      %c0_11 = arith.constant 0 : index
      %12 = vector.load %arg7[%c0_10, %c0_11] : memref<16x48xf32, #tpu.memory_space<vmem>>, vector<16x48xf32>
      %c0_12 = arith.constant 0 : index
      %c0_13 = arith.constant 0 : index
      %13 = vector.load %arg5[%c0_12, %c0_13] : memref<1x48xf32, #tpu.memory_space<vmem>>, vector<1x48xf32>
      %14 = vector.broadcast %13 : vector<1x48xf32> to vector<16x48xf32>
      %15 = arith.addf %12, %14 : vector<16x48xf32>
      %c0_14 = arith.constant 0 : index
      %c0_15 = arith.constant 0 : index
      %16 = vector.load %arg6[%c0_14, %c0_15] : memref<16x48xf32, #tpu.memory_space<vmem>>, vector<16x48xf32>
      tpu.vector_store %arg6[%c0_14, %c0_15], %15 {strides = array<i32>} : memref<16x48xf32, #tpu.memory_space<vmem>>, vector<16x48xf32>,
    } else {
    }
    return
  }
  func.func @transform_0(%arg0: i32, %arg1: i32, %arg2: i32) -> (i32, i32) {
    %c0_i32 = arith.constant 0 : i32
    return %arg0, %arg2 : i32, i32
  }
  func.func @transform_1(%arg0: i32, %arg1: i32, %arg2: i32) -> (i32, i32) {
    %c0_i32 = arith.constant 0 : i32
    return %arg2, %arg1 : i32, i32
  }
  func.func @transform_2(%arg0: i32, %arg1: i32, %arg2: i32) -> (i32, i32) {
    %c0_i32 = arith.constant 0 : i32
    %c0_i32_0 = arith.constant 0 : i32
    return %c0_i32, %arg1 : i32, i32
  }
  func.func @transform_3(%arg0: i32, %arg1: i32, %arg2: i32) -> (i32, i32) {
    %c0_i32 = arith.constant 0 : i32
    return %arg0, %arg1 : i32, i32
  }
}

</mosaic_0001>

<bundles_post_ra>
// kernel: tpu_custom_call.1
= control target key start
LH: loop header
LB: loop body
LE: loop exit
PB: predicated region body
PF: predicated region fallthrough
CT: control target
= control target key end

     0   :  { %8 = vsyncpa [#allocation4], 0  ;;  %s270_s0 = inlined_call_operand.hbm [shape: f32[16,16], index: 0, kind: input, shape index: {}]   ;;  %s271_s1 = inlined_call_operand.hbm [shape: f32[16,48], index: 1, kind: input, shape index: {}]   ;;  %s272_s2 = inlined_call_operand.vmem [shape: f32[1,48], index: 2, kind: input, shape index: {}]   ;;  %s273_s3 = inlined_call_operand.hbm [shape: f32[16,48], index: 3, kind: output, shape index: {}]  }
   0x1   :  { %9 = vsyncpa [#allocation7], 0 }
   0x2   :  { %10 = vsyncpa [#allocation5], 0  ;;  %s15_s14 = sshll.u32 %s270_s0, 4  ;;  %s217_s15 = smov [#allocation3]   ;;  %s16_s14 = int_to_ptr.hbm [resolvable:$true] %s15_s14 }
   0x3   :  { %s17_s16 = sshll.u32 %s217_s15, 4  ;;  %s28_s19 = sshll.u32 %s271_s1, 4  ;;  %s18_s16 = int_to_ptr.vmem [resolvable:$true] %s17_s16  ;;  %s29_s19 = int_to_ptr.hbm [resolvable:$true] %s28_s19 }
   0x4   :  { %s218_s20 = smov 128   ;;  %s219_s21 = smov 8  }
   0x5   :  { %23 = dma.hbm_to_vmem [thread:$0]  %s16_s14, 256, %s18_s16, [#allocation4], %s218_s20, %s218_s20, %s219_s21  }
   0x6   :  { %s220_s22 = smov [#allocation6]  }
   0x7   :  { %s30_s23 = sshll.u32 %s220_s22, 4  ;;  %s31_s23 = int_to_ptr.vmem [resolvable:$true] %s30_s23 }
   0x8   :  { %36 = dma.hbm_to_vmem [thread:$0]  %s29_s19, 256, %s31_s23, [#allocation7], %s218_s20, %s218_s20, %s219_s21  }
   0x9   :  { %211 = dma.done.wait [#allocation4], 256  }
   0xa   :  { %212 = vsyncadd [#allocation4], 4294967040 }
   0xb   :  { %213 = dma.done.wait [#allocation7], 256  }
   0xc   :  { %214 = vsyncadd [#allocation7], 4294967040  ;;  %vm51_vm0 = vcmask 392192   ;;  %v221_v0 = vmov 0.0   ;;  %v59_v1 = vld [vmem:[#allocation6 + $0x8] sm:$0xff]  ;;  %v58_v2 = vld [vmem:[#allocation6] sm:$0xff] }
   0xd   :  { %52 = vst.msk [vmem:[#allocation2] sm:$0xff] %vm51_vm0, %v221_v0  ;;  %81 = vmatpush.msra.mxu0 %v59_v1  ;;  %130 = vmatpush.msra.mxu1 %v59_v1  ;;  %v56_v3 = vld [vmem:[#allocation3] sm:$0xff]  ;;  %vm60_vm1 = vcmask 130048   ;;  %v57_v4 = vld [vmem:[#allocation3 + $0x8] sm:$0xff]  ;;  %v138_v11 = vld [vmem:[%s272_s2] ss:$0 sm:$0xff] }
   0xe   :  { %53 = vst.msk [vmem:[#allocation2 + $0x8] sm:$0xff] %vm51_vm0, %v221_v0  ;;  %s222_s24 = smov [#allocation8]   ;;  %s114_s28 = sshll.u32 %s273_s3, 4  ;;  %s115_s28 = int_to_ptr.hbm [resolvable:$true] %s114_s28 }
   0xf   :  { %82 = vmatpush.msra.mxu0 %v58_v2  ;;  %131 = vmatpush.msra.mxu1 %v58_v2  ;;  %s112_s25 = sshll.u32 %s222_s24, 4  ;;  %s113_s25 = int_to_ptr.vmem [resolvable:$true] %s112_s25 }
  0x10   :  { %128 = vmatmul.msk.f32.vlgmr.msra.gmra.mxu0 %vm60_vm1, %v56_v3  ;;  %129 = vmatmul.msk.f32.vlgmr.msra.gmra.mxu1 %vm60_vm1, %v57_v4 }
  0x14   :  { %v54_v5 = vld [vmem:[#allocation2] sm:$0xff] }
  0x15   :  { %v55_v6 = vld [vmem:[#allocation2 + $0x8] sm:$0xff] }
  0x8d   :  { %v84_v7 = vpop.f32.mrf.mxu0  ;;  %v87_v8 = vpop.f32.mrf.mxu1 }
  0x8e   :  { %v90_v9 = vadd.f32 %v84_v7, %v54_v5  ;;  %v91_v10 = vadd.f32 %v87_v8, %v55_v6 }
  0x90   :  { %93 = vst.msk [vmem:[#allocation2] sm:$0xff] %vm51_vm0, %v90_v9 }
  0x91   :  { %94 = vst.msk [vmem:[#allocation2 + $0x8] sm:$0xff] %vm51_vm0, %v91_v10 }
  0x97   :  { %v98_v12 = vld [vmem:[#allocation2] sm:$0xff] }
  0x98   :  { %v99_v13 = vld [vmem:[#allocation2 + $0x8] sm:$0xff]  ;;  %v104_v14 = vadd.f32 %v138_v11, %v98_v12 }
  0x99   :  { %v105_v15 = vadd.f32 %v138_v11, %v99_v13 }
  0x9a   :  { %106 = vst.msk [vmem:[#allocation8] sm:$0xff] %vm51_vm0, %v104_v14 }
  0x9b   :  { %107 = vst.msk [vmem:[#allocation8 + $0x8] sm:$0xff] %vm51_vm0, %v105_v15 }
  0x9c   :  { %120 = dma.vmem_to_hbm [thread:$0]  %s113_s25, 256, %s115_s28, [#allocation5], %s218_s20, %s218_s20, %s219_s21  }
  0x9d   :  { %215 = dma.done.wait [#allocation5], 256  }
  0x9e   :  { %216 = vsyncadd [#allocation5], 4294967040 }
  0x9f   :  { %125 = vsyncpa [#allocation4], 1 }
  0xa0   :  { %126 = vsyncpa [#allocation7], 1 }
  0xa1   :  { %127 = vsyncpa [#allocation5], 1 }

</bundles_post_ra>
